<compile_context>
chip_gen: v5e
topology: v5e:2x2
jax: 0.10.0
libtpu: 0.0.40
codegen_flags: <defaults>
</compile_context>

<pallas_src>
import functools

import jax
import jax.numpy as jnp
from jax.experimental import pallas as pl
from jax.experimental.pallas import tpu as pltpu


# --------------------------------------------------------------------------- #
# Kernels
# --------------------------------------------------------------------------- #
def _gmm_kernel_per_head(alpha_ref, p_ref, mask_ref, x_ref, o_ref, attn_ref, *,
                         num_kernals):
    """General path. grid = (H, row_tiles, batch_tiles); batch innermost."""
    h = pl.program_id(0)
    b = pl.program_id(2)

    @pl.when(b == 0)
    def _():
        lm = jnp.log(mask_ref[...])                    # one log per (head, tile)
        attn = jnp.zeros(lm.shape, jnp.float32)
        for k in range(num_kernals):                   # static unroll over K
            attn = attn + alpha_ref[k, h] * jnp.exp(p_ref[k, h] * lm)
        attn_ref[...] = attn.astype(attn_ref.dtype)

    # (Tr, C) attn broadcast against (Tb, Tr, C) x tile -> pure HBM-bound multiply.
    o_ref[...] = (attn_ref[...] * x_ref[...]).astype(o_ref.dtype)


def _gmm_kernel_all_heads(alpha_ref, p_ref, mask_ref, x_ref, o_ref, attn_ref, *,
                          num_kernals, num_heads):
    """Small-face path. grid = (batch_tiles,); all heads fused into the block."""
    b = pl.program_id(0)

    @pl.when(b == 0)
    def _():
        lm = jnp.log(mask_ref[...])                    # (1, S*S)
        for h in range(num_heads):                     # static unroll (small H*S*S)
            row = jnp.zeros(lm.shape, jnp.float32)
            for k in range(num_kernals):
                row = row + alpha_ref[k, h] * jnp.exp(p_ref[k, h] * lm)
            attn_ref[pl.ds(h, 1), :] = row.astype(attn_ref.dtype)

    # (H, S*S) attn broadcast against (Tb, H, S*S) x tile.
    o_ref[...] = (attn_ref[...] * x_ref[...]).astype(o_ref.dtype)


# --------------------------------------------------------------------------- #
# Wrapper
# --------------------------------------------------------------------------- #
def _vmem_capacity_bytes():
    """Generation-aware VMEM capacity (v7x: 64 MiB/TC, v5e/v6e: 128 MiB)."""
    try:
        cap = getattr(pltpu.get_tpu_info(), "vmem_capacity_bytes", None)
        if cap:
            return int(cap)
    except Exception:
        pass
    return 64 << 20     # conservative default (v7x per-TensorCore VMEM)


def gaussian_mixture_mask(x, sigma, alpha, mask):
    """x: (B, H, S, S); sigma, alpha: (K, H, 1, 1); mask: (S, S)."""
    B, H, S, _ = x.shape
    K = sigma.shape[0]

    # Fold sigma into the exponent; per-(kernel, head) scalars live in SMEM.
    p = 1.0 / (sigma.reshape(K, H).astype(jnp.float32) ** 2 + 1e-5)
    a = alpha.reshape(K, H).astype(jnp.float32)

    itemsize = x.dtype.itemsize
    # attn scratch dtype: match x when it is narrow (halves scratch + reload).
    sdt = jnp.float32 if x.dtype == jnp.float32 else x.dtype
    sitem = jnp.dtype(sdt).itemsize

    vmem_cap = _vmem_capacity_bytes()
    budget = max(16 << 20, vmem_cap - (8 << 20))                 # Mosaic headroom
    x_target = (4 << 20) if vmem_cap >= (96 << 20) else (2 << 20)  # per-buffer goal
    face_target = 2 << 20                                          # mask/attn tile

    cost = pl.CostEstimate(
        flops=2 * B * H * S * S + 2 * K * H * S * S,
        transcendentals=(K + 1) * H * S * S,
        bytes_accessed=2 * B * H * S * S * itemsize + S * S * 4,
    )

    ss = S * S

    # ---------------- small-face path: fuse all heads into the block -------- #
    if ss <= 8 * 128:
        x3 = x.reshape(B, H, ss)
        mask2 = mask.reshape(1, ss).astype(jnp.float32)

        blk_bh = H * ss * itemsize                      # one batch element / block
        fixed = 2 * ss * 4 + H * ss * sitem             # mask dbl-buf + attn scratch
        max_tb = max(1, (budget - fixed) // max(1, 4 * blk_bh))
        Tb = max(1, min(B, max(1, x_target // max(1, blk_bh)), max_tb))
        n_b = pl.cdiv(B, Tb)

        vmem_limit = int(min(vmem_cap - (4 << 20),
                             max(32 << 20, 4 * Tb * blk_bh + fixed + (8 << 20))))

        kernel = functools.partial(_gmm_kernel_all_heads,
                                   num_kernals=K, num_heads=H)
        out3 = pl.pallas_call(
            kernel,
            out_shape=jax.ShapeDtypeStruct((B, H, ss), x.dtype),
            grid=(n_b,),
            in_specs=[
                pl.BlockSpec(memory_space=pltpu.MemorySpace.SMEM),   # alpha (K, H)
                pl.BlockSpec(memory_space=pltpu.MemorySpace.SMEM),   # exponent (K, H)
                pl.BlockSpec((1, ss), lambda b: (0, 0)),             # mask (1, S*S)
                pl.BlockSpec((Tb, H, ss), lambda b: (b, 0, 0)),      # x tile
            ],
            out_specs=pl.BlockSpec((Tb, H, ss), lambda b: (b, 0, 0)),
            scratch_shapes=[pltpu.VMEM((H, ss), sdt)],               # cached attn
            compiler_params=pltpu.CompilerParams(
                dimension_semantics=("arbitrary",),
                vmem_limit_bytes=vmem_limit),
            cost_estimate=cost,
        )(a, p, mask2, x3)
        return out3.reshape(B, H, S, S)

    # ---------------- general path: per-head grid, lane-dense (R, C) face ---- #
    if ss % 128 == 0:
        C = 128
        for c in (512, 256):
            if ss % c == 0 and ss // c >= 8:
                C = c
                break
        R = ss // C
    else:
        # TODO(synk): S*S with no 128-multiple factor keeps the native (S, S)
        # face; edge lane-tiles use masked stores (correct, slightly slower).
        R, C = S, S

    x4 = x.reshape(B, H, R, C)
    mask2 = mask.reshape(R, C).astype(jnp.float32)

    if R * C * 4 <= face_target:
        Tr = R                                   # whole face per (head) tile
    else:
        Tr = min(R, max(8, ((face_target // (C * 4)) // 8) * 8))
    n_r = pl.cdiv(R, Tr)

    blk_rows = Tr * C * itemsize                 # x bytes per batch element / block
    fixed = 2 * Tr * C * 4 + Tr * C * sitem      # mask dbl-buf + attn scratch
    max_tb = max(1, (budget - fixed) // max(1, 4 * blk_rows))
    Tb = max(1, min(B, max(1, x_target // max(1, blk_rows)), max_tb))
    n_b = pl.cdiv(B, Tb)

    vmem_limit = int(min(vmem_cap - (4 << 20),
                         max(32 << 20, 4 * Tb * blk_rows + fixed + (8 << 20))))

    kernel = functools.partial(_gmm_kernel_per_head, num_kernals=K)
    out4 = pl.pallas_call(
        kernel,
        out_shape=jax.ShapeDtypeStruct((B, H, R, C), x.dtype),
        grid=(H, n_r, n_b),
        in_specs=[
            pl.BlockSpec(memory_space=pltpu.MemorySpace.SMEM),            # alpha (K, H)
            pl.BlockSpec(memory_space=pltpu.MemorySpace.SMEM),            # exponent (K, H)
            pl.BlockSpec((Tr, C), lambda h, r, b: (r, 0)),                # mask tile
            pl.BlockSpec((Tb, None, Tr, C), lambda h, r, b: (b, h, r, 0)),  # x tile
        ],
        out_specs=pl.BlockSpec((Tb, None, Tr, C), lambda h, r, b: (b, h, r, 0)),
        scratch_shapes=[pltpu.VMEM((Tr, C), sdt)],                        # cached attn
        compiler_params=pltpu.CompilerParams(
            dimension_semantics=("parallel", "parallel", "arbitrary"),
            vmem_limit_bytes=vmem_limit),
        cost_estimate=cost,
    )(a, p, mask2, x4)
    return out4.reshape(B, H, S, S)


# --------------------------------------------------------------------------- #
# Self-test
# --------------------------------------------------------------------------- #
if __name__ == "__main__":
    def run_case(B, H, S, K, key):
        k1, k2, k3 = jax.random.split(key, 3)
        # Deterministic synthetic parameters (same shapes as nn.Module __init__).
        sigma = jax.random.normal(k1, (K, H, 1, 1), jnp.float32) * 10.0 + 10.0
        alpha = jax.random.normal(k2, (K, H, 1, 1), jnp.float32) * 2.0
        # Positive Gaussian-distance mask in (0, 1].
        idx = jnp.arange(S, dtype=jnp.float32)
        mask = jnp.exp(-((idx[:, None] - idx[None, :]) ** 2) / (2.0 * S))
        x = jax.random.normal(k3, (B, H, S, S), jnp.float32)

        out = jax.block_until_ready(gaussian_mixture_mask(x, sigma, alpha, mask))

        # Pure-JAX reference with exactly the PyTorch broadcasting/reduction.
        attn_ref = jnp.sum(alpha * mask ** (1.0 / (sigma ** 2 + 1e-5)), axis=0)
        expect = attn_ref * x
        assert out.shape == (B, H, S, S)
        assert jnp.allclose(out, expect, rtol=1e-4, atol=1e-4), (B, H, S)

    key = jax.random.PRNGKey(0)
    k_small, k_big = jax.random.split(key)
    run_case(2, 4, 16, 3, k_small)   # small-face fused-heads path
    run_case(2, 4, 64, 3, k_big)     # general per-head, lane-dense path

    print("KERNEL_OK")
</pallas_src>

<mosaic_0001>
module attributes {stable_mosaic.version = 11 : i64} {
  func.func @_gmm_kernel_all_heads(%arg0: i32, %arg1: memref<3x4xf32, #tpu.memory_space<smem>>, %arg2: memref<3x4xf32, #tpu.memory_space<smem>>, %arg3: memref<1x256xf32, #tpu.memory_space<vmem>>, %arg4: memref<2x4x256xf32, #tpu.memory_space<vmem>>, %arg5: memref<2x4x256xf32, #tpu.memory_space<vmem>>, %arg6: memref<4x256xf32, #tpu.memory_space<vmem>>) attributes {dimension_semantics = [#tpu.dimension_semantics<arbitrary>], iteration_bounds = array<i64: 1>, scalar_prefetch = 0 : i64, scratch_operands = 1 : i64, tpu.core_type = #tpu.core_type<tc>, window_params = [{transform_indices = @transform_0, window_bounds = array<i64: 3, 4>}, {transform_indices = @transform_1, window_bounds = array<i64: 3, 4>}, {pipeline_mode = #tpu.pipeline_mode<synchronous>, transform_indices = @transform_2, window_bounds = array<i64: 1, 256>}, {transform_indices = @transform_3, window_bounds = array<i64: 2, 4, 256>}, {transform_indices = @transform_4, window_bounds = array<i64: 2, 4, 256>}]} {
    %c0_i32 = arith.constant 0 : i32
    %0 = arith.cmpi eq, %arg0, %c0_i32 : i32
    %1 = arith.extui %0 : i1 to i32
    %c0_i32_0 = arith.constant 0 : i32
    %2 = arith.cmpi ne, %1, %c0_i32_0 : i32
    scf.if %2 {
      %c0_8 = arith.constant 0 : index
      %c0_9 = arith.constant 0 : index
      %9 = vector.load %arg3[%c0_8, %c0_9] : memref<1x256xf32, #tpu.memory_space<vmem>>, vector<1x256xf32>
      %10 = math.log %9 : vector<1x256xf32>
      %cst = arith.constant 0.000000e+00 : f32
      %11 = vector.broadcast %cst : f32 to vector<1x256xf32>
      %c0_10 = arith.constant 0 : index
      %c0_11 = arith.constant 0 : index
      %12 = memref.load %arg1[%c0_10, %c0_11] : memref<3x4xf32, #tpu.memory_space<smem>>
      %c0_12 = arith.constant 0 : index
      %c0_13 = arith.constant 0 : index
      %13 = memref.load %arg2[%c0_12, %c0_13] : memref<3x4xf32, #tpu.memory_space<smem>>
      %14 = vector.broadcast %13 : f32 to vector<1x256xf32>
      %15 = arith.mulf %14, %10 : vector<1x256xf32>
      %16 = math.exp %15 : vector<1x256xf32>
      %17 = vector.broadcast %12 : f32 to vector<1x256xf32>
      %18 = arith.mulf %17, %16 : vector<1x256xf32>
      %19 = arith.addf %11, %18 : vector<1x256xf32>
      %c1 = arith.constant 1 : index
      %c0_14 = arith.constant 0 : index
      %20 = memref.load %arg1[%c1, %c0_14] : memref<3x4xf32, #tpu.memory_space<smem>>
      %c1_15 = arith.constant 1 : index
      %c0_16 = arith.constant 0 : index
      %21 = memref.load %arg2[%c1_15, %c0_16] : memref<3x4xf32, #tpu.memory_space<smem>>
      %22 = vector.broadcast %21 : f32 to vector<1x256xf32>
      %23 = arith.mulf %22, %10 : vector<1x256xf32>
      %24 = math.exp %23 : vector<1x256xf32>
      %25 = vector.broadcast %20 : f32 to vector<1x256xf32>
      %26 = arith.mulf %25, %24 : vector<1x256xf32>
      %27 = arith.addf %19, %26 : vector<1x256xf32>
      %c2 = arith.constant 2 : index
      %c0_17 = arith.constant 0 : index
      %28 = memref.load %arg1[%c2, %c0_17] : memref<3x4xf32, #tpu.memory_space<smem>>
      %c2_18 = arith.constant 2 : index
      %c0_19 = arith.constant 0 : index
      %29 = memref.load %arg2[%c2_18, %c0_19] : memref<3x4xf32, #tpu.memory_space<smem>>
      %30 = vector.broadcast %29 : f32 to vector<1x256xf32>
      %31 = arith.mulf %30, %10 : vector<1x256xf32>
      %32 = math.exp %31 : vector<1x256xf32>
      %33 = vector.broadcast %28 : f32 to vector<1x256xf32>
      %34 = arith.mulf %33, %32 : vector<1x256xf32>
      %35 = arith.addf %27, %34 : vector<1x256xf32>
      %c0_20 = arith.constant 0 : index
      %c0_21 = arith.constant 0 : index
      %36 = vector.load %arg6[%c0_20, %c0_21] : memref<4x256xf32, #tpu.memory_space<vmem>>, vector<1x256xf32>
      tpu.vector_store %arg6[%c0_20, %c0_21], %35 {strides = array<i32>} : memref<4x256xf32, #tpu.memory_space<vmem>>, vector<1x256xf32>,
      %cst_22 = arith.constant 0.000000e+00 : f32
      %37 = vector.broadcast %cst_22 : f32 to vector<1x256xf32>
      %c0_23 = arith.constant 0 : index
      %c1_24 = arith.constant 1 : index
      %38 = memref.load %arg1[%c0_23, %c1_24] : memref<3x4xf32, #tpu.memory_space<smem>>
      %c0_25 = arith.constant 0 : index
      %c1_26 = arith.constant 1 : index
      %39 = memref.load %arg2[%c0_25, %c1_26] : memref<3x4xf32, #tpu.memory_space<smem>>
      %40 = vector.broadcast %39 : f32 to vector<1x256xf32>
      %41 = arith.mulf %40, %10 : vector<1x256xf32>
      %42 = math.exp %41 : vector<1x256xf32>
      %43 = vector.broadcast %38 : f32 to vector<1x256xf32>
      %44 = arith.mulf %43, %42 : vector<1x256xf32>
      %45 = arith.addf %37, %44 : vector<1x256xf32>
      %c1_27 = arith.constant 1 : index
      %c1_28 = arith.constant 1 : index
      %46 = memref.load %arg1[%c1_27, %c1_28] : memref<3x4xf32, #tpu.memory_space<smem>>
      %c1_29 = arith.constant 1 : index
      %c1_30 = arith.constant 1 : index
      %47 = memref.load %arg2[%c1_29, %c1_30] : memref<3x4xf32, #tpu.memory_space<smem>>
      %48 = vector.broadcast %47 : f32 to vector<1x256xf32>
      %49 = arith.mulf %48, %10 : vector<1x256xf32>
      %50 = math.exp %49 : vector<1x256xf32>
      %51 = vector.broadcast %46 : f32 to vector<1x256xf32>
      %52 = arith.mulf %51, %50 : vector<1x256xf32>
      %53 = arith.addf %45, %52 : vector<1x256xf32>
      %c2_31 = arith.constant 2 : index
      %c1_32 = arith.constant 1 : index
      %54 = memref.load %arg1[%c2_31, %c1_32] : memref<3x4xf32, #tpu.memory_space<smem>>
      %c2_33 = arith.constant 2 : index
      %c1_34 = arith.constant 1 : index
      %55 = memref.load %arg2[%c2_33, %c1_34] : memref<3x4xf32, #tpu.memory_space<smem>>
      %56 = vector.broadcast %55 : f32 to vector<1x256xf32>
      %57 = arith.mulf %56, %10 : vector<1x256xf32>
      %58 = math.exp %57 : vector<1x256xf32>
      %59 = vector.broadcast %54 : f32 to vector<1x256xf32>
      %60 = arith.mulf %59, %58 : vector<1x256xf32>
      %61 = arith.addf %53, %60 : vector<1x256xf32>
      %c1_35 = arith.constant 1 : index
      %c0_36 = arith.constant 0 : index
      %62 = vector.load %arg6[%c1_35, %c0_36] : memref<4x256xf32, #tpu.memory_space<vmem>>, vector<1x256xf32>
      tpu.vector_store %arg6[%c1_35, %c0_36], %61 {strides = array<i32>} : memref<4x256xf32, #tpu.memory_space<vmem>>, vector<1x256xf32>,
      %cst_37 = arith.constant 0.000000e+00 : f32
      %63 = vector.broadcast %cst_37 : f32 to vector<1x256xf32>
      %c0_38 = arith.constant 0 : index
      %c2_39 = arith.constant 2 : index
      %64 = memref.load %arg1[%c0_38, %c2_39] : memref<3x4xf32, #tpu.memory_space<smem>>
      %c0_40 = arith.constant 0 : index
      %c2_41 = arith.constant 2 : index
      %65 = memref.load %arg2[%c0_40, %c2_41] : memref<3x4xf32, #tpu.memory_space<smem>>
      %66 = vector.broadcast %65 : f32 to vector<1x256xf32>
      %67 = arith.mulf %66, %10 : vector<1x256xf32>
      %68 = math.exp %67 : vector<1x256xf32>
      %69 = vector.broadcast %64 : f32 to vector<1x256xf32>
      %70 = arith.mulf %69, %68 : vector<1x256xf32>
      %71 = arith.addf %63, %70 : vector<1x256xf32>
      %c1_42 = arith.constant 1 : index
      %c2_43 = arith.constant 2 : index
      %72 = memref.load %arg1[%c1_42, %c2_43] : memref<3x4xf32, #tpu.memory_space<smem>>
      %c1_44 = arith.constant 1 : index
      %c2_45 = arith.constant 2 : index
      %73 = memref.load %arg2[%c1_44, %c2_45] : memref<3x4xf32, #tpu.memory_space<smem>>
      %74 = vector.broadcast %73 : f32 to vector<1x256xf32>
      %75 = arith.mulf %74, %10 : vector<1x256xf32>
      %76 = math.exp %75 : vector<1x256xf32>
      %77 = vector.broadcast %72 : f32 to vector<1x256xf32>
      %78 = arith.mulf %77, %76 : vector<1x256xf32>
      %79 = arith.addf %71, %78 : vector<1x256xf32>
      %c2_46 = arith.constant 2 : index
      %c2_47 = arith.constant 2 : index
      %80 = memref.load %arg1[%c2_46, %c2_47] : memref<3x4xf32, #tpu.memory_space<smem>>
      %c2_48 = arith.constant 2 : index
      %c2_49 = arith.constant 2 : index
      %81 = memref.load %arg2[%c2_48, %c2_49] : memref<3x4xf32, #tpu.memory_space<smem>>
      %82 = vector.broadcast %81 : f32 to vector<1x256xf32>
      %83 = arith.mulf %82, %10 : vector<1x256xf32>
      %84 = math.exp %83 : vector<1x256xf32>
      %85 = vector.broadcast %80 : f32 to vector<1x256xf32>
      %86 = arith.mulf %85, %84 : vector<1x256xf32>
      %87 = arith.addf %79, %86 : vector<1x256xf32>
      %c2_50 = arith.constant 2 : index
      %c0_51 = arith.constant 0 : index
      %88 = vector.load %arg6[%c2_50, %c0_51] : memref<4x256xf32, #tpu.memory_space<vmem>>, vector<1x256xf32>
      tpu.vector_store %arg6[%c2_50, %c0_51], %87 {strides = array<i32>} : memref<4x256xf32, #tpu.memory_space<vmem>>, vector<1x256xf32>,
      %cst_52 = arith.constant 0.000000e+00 : f32
      %89 = vector.broadcast %cst_52 : f32 to vector<1x256xf32>
      %c0_53 = arith.constant 0 : index
      %c3 = arith.constant 3 : index
      %90 = memref.load %arg1[%c0_53, %c3] : memref<3x4xf32, #tpu.memory_space<smem>>
      %c0_54 = arith.constant 0 : index
      %c3_55 = arith.constant 3 : index
      %91 = memref.load %arg2[%c0_54, %c3_55] : memref<3x4xf32, #tpu.memory_space<smem>>
      %92 = vector.broadcast %91 : f32 to vector<1x256xf32>
      %93 = arith.mulf %92, %10 : vector<1x256xf32>
      %94 = math.exp %93 : vector<1x256xf32>
      %95 = vector.broadcast %90 : f32 to vector<1x256xf32>
      %96 = arith.mulf %95, %94 : vector<1x256xf32>
      %97 = arith.addf %89, %96 : vector<1x256xf32>
      %c1_56 = arith.constant 1 : index
      %c3_57 = arith.constant 3 : index
      %98 = memref.load %arg1[%c1_56, %c3_57] : memref<3x4xf32, #tpu.memory_space<smem>>
      %c1_58 = arith.constant 1 : index
      %c3_59 = arith.constant 3 : index
      %99 = memref.load %arg2[%c1_58, %c3_59] : memref<3x4xf32, #tpu.memory_space<smem>>
      %100 = vector.broadcast %99 : f32 to vector<1x256xf32>
      %101 = arith.mulf %100, %10 : vector<1x256xf32>
      %102 = math.exp %101 : vector<1x256xf32>
      %103 = vector.broadcast %98 : f32 to vector<1x256xf32>
      %104 = arith.mulf %103, %102 : vector<1x256xf32>
      %105 = arith.addf %97, %104 : vector<1x256xf32>
      %c2_60 = arith.constant 2 : index
      %c3_61 = arith.constant 3 : index
      %106 = memref.load %arg1[%c2_60, %c3_61] : memref<3x4xf32, #tpu.memory_space<smem>>
      %c2_62 = arith.constant 2 : index
      %c3_63 = arith.constant 3 : index
      %107 = memref.load %arg2[%c2_62, %c3_63] : memref<3x4xf32, #tpu.memory_space<smem>>
      %108 = vector.broadcast %107 : f32 to vector<1x256xf32>
      %109 = arith.mulf %108, %10 : vector<1x256xf32>
      %110 = math.exp %109 : vector<1x256xf32>
      %111 = vector.broadcast %106 : f32 to vector<1x256xf32>
      %112 = arith.mulf %111, %110 : vector<1x256xf32>
      %113 = arith.addf %105, %112 : vector<1x256xf32>
      %c3_64 = arith.constant 3 : index
      %c0_65 = arith.constant 0 : index
      %114 = vector.load %arg6[%c3_64, %c0_65] : memref<4x256xf32, #tpu.memory_space<vmem>>, vector<1x256xf32>
      tpu.vector_store %arg6[%c3_64, %c0_65], %113 {strides = array<i32>} : memref<4x256xf32, #tpu.memory_space<vmem>>, vector<1x256xf32>,
    } else {
    }
    %c0 = arith.constant 0 : index
    %c0_1 = arith.constant 0 : index
    %3 = vector.load %arg6[%c0, %c0_1] : memref<4x256xf32, #tpu.memory_space<vmem>>, vector<4x256xf32>
    %c0_2 = arith.constant 0 : index
    %c0_3 = arith.constant 0 : index
    %c0_4 = arith.constant 0 : index
    %4 = vector.load %arg4[%c0_2, %c0_3, %c0_4] : memref<2x4x256xf32, #tpu.memory_space<vmem>>, vector<2x4x256xf32>
    %5 = vector.shape_cast %3 : vector<4x256xf32> to vector<1x4x256xf32>
    %6 = vector.broadcast %5 : vector<1x4x256xf32> to vector<2x4x256xf32>
    %7 = arith.mulf %6, %4 : vector<2x4x256xf32>
    %c0_5 = arith.constant 0 : index
    %c0_6 = arith.constant 0 : index
    %c0_7 = arith.constant 0 : index
    %8 = vector.load %arg5[%c0_5, %c0_6, %c0_7] : memref<2x4x256xf32, #tpu.memory_space<vmem>>, vector<2x4x256xf32>
    tpu.vector_store %arg5[%c0_5, %c0_6, %c0_7], %7 {strides = array<i32>} : memref<2x4x256xf32, #tpu.memory_space<vmem>>, vector<2x4x256xf32>,
    return
  }
  func.func @transform_0(%arg0: i32) -> (i32, i32) {
    %c0_i32 = arith.constant 0 : i32
    %c0_i32_0 = arith.constant 0 : i32
    %c0_i32_1 = arith.constant 0 : i32
    return %c0_i32, %c0_i32_0 : i32, i32
  }
  func.func @transform_1(%arg0: i32) -> (i32, i32) {
    %c0_i32 = arith.constant 0 : i32
    %c0_i32_0 = arith.constant 0 : i32
    %c0_i32_1 = arith.constant 0 : i32
    return %c0_i32, %c0_i32_0 : i32, i32
  }
  func.func @transform_2(%arg0: i32) -> (i32, i32) {
    %c0_i32 = arith.constant 0 : i32
    %c0_i32_0 = arith.constant 0 : i32
    %c0_i32_1 = arith.constant 0 : i32
    return %c0_i32, %c0_i32_0 : i32, i32
  }
  func.func @transform_3(%arg0: i32) -> (i32, i32, i32) {
    %c0_i32 = arith.constant 0 : i32
    %c0_i32_0 = arith.constant 0 : i32
    %c0_i32_1 = arith.constant 0 : i32
    return %arg0, %c0_i32, %c0_i32_0 : i32, i32, i32
  }
  func.func @transform_4(%arg0: i32) -> (i32, i32, i32) {
    %c0_i32 = arith.constant 0 : i32
    %c0_i32_0 = arith.constant 0 : i32
    %c0_i32_1 = arith.constant 0 : i32
    return %arg0, %c0_i32, %c0_i32_0 : i32, i32, i32
  }
}

</mosaic_0001>

<bundles_post_ra>
// kernel: tpu_custom_call.1
= control target key start
LH: loop header
LB: loop body
LE: loop exit
PB: predicated region body
PF: predicated region fallthrough
CT: control target
= control target key end

     0   :  { %9 = vsyncpa [#allocation6], 0  ;;  %s516_s0 = inlined_call_operand.hbm [shape: f32[3,4], index: 0, kind: input, shape index: {}]   ;;  %s517_s1 = inlined_call_operand.hbm [shape: f32[3,4], index: 1, kind: input, shape index: {}]   ;;  %s518_s2 = inlined_call_operand.hbm [shape: f32[1,256], index: 2, kind: input, shape index: {}]   ;;  %s519_s3 = inlined_call_operand.hbm [shape: f32[2,4,256], index: 3, kind: input, shape index: {}]   ;;  %s520_s4 = inlined_call_operand.hbm [shape: f32[2,4,256], index: 4, kind: output, shape index: {}]  }
   0x1   :  { %10 = vsyncpa [#allocation8], 0 }
   0x2   :  { %11 = vsyncpa [#allocation4], 0 }
   0x3   :  { %12 = vsyncpa [#allocation11], 0 }
   0x4   :  { %13 = vsyncpa [#allocation5], 0  ;;  %s19_s17 = sshll.u32 %s516_s0, 4  ;;  %s28_s20 = sshll.u32 %s517_s1, 4  ;;  %s20_s17 = int_to_ptr.hbm [resolvable:$true] %s19_s17  ;;  %s29_s20 = int_to_ptr.hbm [resolvable:$true] %s28_s20 }
   0x5   :  { %s389_s21 = smov [#allocation3]   ;;  %s390_s22 = smov [#allocation7]  }
   0x6   :  { %22 = dma.hbm_to_smem %s20_s17, 64, %s389_s21, [#allocation6]  }
   0x7   :  { %31 = dma.hbm_to_smem %s29_s20, 64, %s390_s22, [#allocation8]  }
   0x8   :  { %s37_s25 = sshll.u32 %s518_s2, 4  ;;  %s391_s26 = smov [#allocation9]   ;;  %s38_s25 = int_to_ptr.hbm [resolvable:$true] %s37_s25 }
   0x9   :  { %s39_s27 = sshll.u32 %s391_s26, 4  ;;  %s47_s29 = sshll.u32 %s519_s3, 4  ;;  %s40_s27 = int_to_ptr.vmem [resolvable:$true] %s39_s27  ;;  %s48_s29 = int_to_ptr.hbm [resolvable:$true] %s47_s29 }
   0xa   :  { %42 = dma.hbm_to_vmem [thread:$0]  %s38_s25, 32, %s40_s27, [#allocation4]  }
   0xb   :  { %s392_s1 = smov [#allocation10]   ;;  %s393_s5 = smov 128  }
   0xc   :  { %s49_s30 = sshll.u32 %s392_s1, 4  ;;  %s394_s6 = smov 8   ;;  %s50_s30 = int_to_ptr.vmem [resolvable:$true] %s49_s30 }
   0xd   :  { %55 = dma.hbm_to_vmem [thread:$0]  %s48_s29, 256, %s50_s30, [#allocation11], %s393_s5, %s393_s5, %s394_s6  }
   0xe   :  { %379 = dma.done.wait [#allocation6], 64  }
   0xf   :  { %380 = vsyncadd [#allocation6], 4294967232 }
  0x10   :  { %381 = dma.done.wait [#allocation8], 64  }
  0x11   :  { %382 = vsyncadd [#allocation8], 4294967232 }
  0x12   :  { %383 = dma.done.wait [#allocation4], 32  }
  0x13   :  { %384 = vsyncadd [#allocation4], 4294967264 }
  0x14   :  { %385 = dma.done.wait [#allocation11], 256  }
  0x15   :  { %386 = vsyncadd [#allocation11], 4294967040 }
  0x16   :  { %72 = sfence }
  0x17   :  { %v77_v0 = vld [vmem:[#allocation9] sm:$0x3]  ;;  %s81_s2 = sld [smem:[#allocation7]]  ;;  %v107_v29 = vlaneseq  ;;  %s395_s0 = smov [#allocation12]  }
  0x18   :  { %257 = vlog2.f32 %v77_v0  ;;  %s229_s3 = sld [smem:[#allocation7 + $0x80]]  ;;  %s210_s29 = sshll.u32 %s395_s0, 4  ;;  %s211_s29 = int_to_ptr.vmem [resolvable:$true] %s210_s29 }
  0x19   :  { %s231_s7 = sld [smem:[#allocation7 + $0x100]]  ;;  %vm482_vm0 = vcmp.lt.s32.totalorder %v107_v29, 256 }
  0x1a   :  { %s436_s8 = sld [smem:[#allocation3]] }
  0x1b   :  { %s233_s9 = sld [smem:[#allocation7 + $0x1]] }
  0x1c   :  { %s440_s10 = sld [smem:[#allocation3 + $0x80]] }
  0x1d   :  { %v82_v2 = vstv %s81_s2  ;;  %s235_s11 = sld [smem:[#allocation7 + $0x81]]  ;;  %s212_s2 = sshll.u32 %s520_s4, 4  ;;  %s213_s2 = int_to_ptr.hbm [resolvable:$true] %s212_s2 }
  0x1e   :  { %v258_v1 = vpop.eup %257  ;;  %v91_v4 = vstv %s229_s3  ;;  %s444_s12 = sld [smem:[#allocation3 + $0x100]] }
  0x1f   :  { %v438_v3 = vmul.f32 0.6931472, %v258_v1  ;;  %v100_v7 = vstv %s231_s7  ;;  %s237_s13 = sld [smem:[#allocation7 + $0x101]] }
  0x20   :  { %s447_s14 = sld [smem:[#allocation3 + $0x1]]  ;;  %v86_v18 = vstv %s436_s8 }
  0x21   :  { %v83_v5 = vmul.f32 %v82_v2, %v438_v3  ;;  %v92_v6 = vmul.f32 %v91_v4, %v438_v3  ;;  %v101_v10 = vmul.f32 %v100_v7, %v438_v3  ;;  %v114_v11 = vstv %s233_s9  ;;  %s239_s15 = sld [smem:[#allocation7 + $0x2]] }
  0x22   :  { %v115_v13 = vmul.f32 %v114_v11, %v438_v3  ;;  %s450_s16 = sld [smem:[#allocation3 + $0x81]]  ;;  %v95_v21 = vstv %s440_s10 }
  0x23   :  { %v84_v8 = vmul.f32 1.442695, %v83_v5  ;;  %v93_v9 = vmul.f32 1.442695, %v92_v6  ;;  %v102_v12 = vmul.f32 1.442695, %v101_v10  ;;  %v123_v14 = vstv %s235_s11 }
  0x24   :  { %s452_s17 = sld [smem:[#allocation7 + $0x82]]  ;;  %v116_v15 = vmul.f32 1.442695, %v115_v13  ;;  %v124_v16 = vmul.f32 %v123_v14, %v438_v3  ;;  %v104_v24 = vstv %s444_s12 }
  0x25   :  { %259 = vpow2.f32 %v84_v8  ;;  %s455_s18 = sld [smem:[#allocation3 + $0x101]]  ;;  %v132_v17 = vstv %s237_s13 }
  0x26   :  { %261 = vpow2.f32 %v93_v9  ;;  %s457_s19 = sld [smem:[#allocation7 + $0x102]]  ;;  %v125_v19 = vmul.f32 1.442695, %v124_v16  ;;  %v133_v20 = vmul.f32 %v132_v17, %v438_v3  ;;  %v118_v30 = vstv %s447_s14 }
  0x27   :  { %263 = vpow2.f32 %v102_v12  ;;  %v143_v22 = vstv %s239_s15  ;;  %s462_s20 = sld [smem:[#allocation7 + $0x3]] }
  0x28   :  { %265 = vpow2.f32 %v116_v15  ;;  %v134_v25 = vmul.f32 1.442695, %v133_v20  ;;  %s465_s21 = sld [smem:[#allocation3 + $0x2]]  ;;  %v144_v26 = vmul.f32 %v143_v22, %v438_v3  ;;  %v127_v37 = vstv %s450_s16  ;;  %v201_v22 = vld [vmem:[#allocation10 + $0x8] sm:$0xff] }
  0x29   :  { %267 = vpow2.f32 %v125_v19  ;;  %s470_s22 = sld [smem:[#allocation7 + $0x83]] }
  0x2a   :  { %v152_v31 = vstv %s452_s17  ;;  %269 = vpow2.f32 %v134_v25  ;;  %v145_v34 = vmul.f32 1.442695, %v144_v26  ;;  %s472_s23 = sld [smem:[#allocation3 + $0x82]] }
  0x2b   :  { %v260_v23 = vpop.eup %259  ;;  %v153_v35 = vmul.f32 %v152_v31, %v438_v3  ;;  %s477_s24 = sld [smem:[#allocation7 + $0x103]]  ;;  %v136_v45 = vstv %s455_s18 }
  0x2c   :  { %v262_v27 = vpop.eup %261  ;;  %v87_v28 = vmul.f32 %v260_v23, %v86_v18  ;;  %v161_v38 = vstv %s457_s19  ;;  %271 = vpow2.f32 %v145_v34  ;;  %s479_s25 = sld [smem:[#allocation3 + $0x102]] }
  0x2d   :  { %v264_v32 = vpop.eup %263  ;;  %v96_v33 = vmul.f32 %v262_v27, %v95_v21  ;;  %v154_v41 = vmul.f32 1.442695, %v153_v35  ;;  %v162_v42 = vmul.f32 %v161_v38, %v438_v3  ;;  %v172_v46 = vstv %s462_s20  ;;  %s488_s26 = sld [smem:[#allocation3 + $0x3]]  ;;  %v200_v21 = vld [vmem:[#allocation10] sm:$0xff] }
  0x2e   :  { %v105_v36 = vmul.f32 %v264_v32, %v104_v24  ;;  %v266_v39 = vpop.eup %265  ;;  %v173_v50 = vmul.f32 %v172_v46, %v438_v3  ;;  %s491_s27 = sld [smem:[#allocation3 + $0x83]]  ;;  %v147_v54 = vstv %s465_s21 }
  0x2f   :  { %v97_v40 = vadd.f32 %v96_v33, %v87_v28  ;;  %v119_v44 = vmul.f32 %v266_v39, %v118_v30  ;;  %v268_v47 = vpop.eup %267  ;;  %273 = vpow2.f32 %v154_v41  ;;  %v163_v49 = vmul.f32 1.442695, %v162_v42  ;;  %s248_s28 = sld [smem:[#allocation3 + $0x103]] }
  0x30   :  { %v128_v51 = vmul.f32 %v268_v47, %v127_v37  ;;  %v181_v52 = vstv %s470_s22  ;;  %v270_v53 = vpop.eup %269  ;;  %v174_v55 = vmul.f32 1.442695, %v173_v50  ;;  %v156_v61 = vstv %s472_s23 }
  0x31   :  { %v106_v48 = vadd.f32 %v105_v36, %v97_v40  ;;  %275 = vpow2.f32 %v163_v49  ;;  %v182_v56 = vmul.f32 %v181_v52, %v438_v3  ;;  %v137_v58 = vmul.f32 %v270_v53, %v136_v45 }
  0x32   :  { %v129_v57 = vadd.f32 %v128_v51, %v119_v44  ;;  %v190_v59 = vstv %s477_s24  ;;  %v272_v60 = vpop.eup %271  ;;  %277 = vpow2.f32 %v174_v55  ;;  %v165_v4 = vstv %s479_s25 }
  0x33   :  { %111 = vst.msk [vmem:[#allocation2] ss:$4 sm:$0x3] %vm482_vm0, %v106_v48  ;;  %v183_v62 = vmul.f32 1.442695, %v182_v56  ;;  %v191_v63 = vmul.f32 %v190_v59, %v438_v3  ;;  %v148_v1 = vmul.f32 %v272_v60, %v147_v54  ;;  %v176_v8 = vstv %s488_s26 }
  0x34   :  { %v138_v0 = vadd.f32 %v137_v58, %v129_v57  ;;  %v185_v12 = vstv %s491_s27 }
  0x35   :  { %v274_v2 = vpop.eup %273  ;;  %279 = vpow2.f32 %v183_v62  ;;  %v192_v5 = vmul.f32 1.442695, %v191_v63  ;;  %v194_v15 = vstv %s248_s28 }
  0x36   :  { %140 = vst.msk [vmem:[#allocation2 + $0x1] ss:$4 sm:$0x3] %vm482_vm0, %v138_v0  ;;  %v157_v6 = vmul.f32 %v274_v2, %v156_v61 }
  0x37   :  { %v276_v7 = vpop.eup %275  ;;  %281 = vpow2.f32 %v192_v5 }
  0x38   :  { %v158_v9 = vadd.f32 %v157_v6, %v148_v1  ;;  %v166_v10 = vmul.f32 %v276_v7, %v165_v4  ;;  %v278_v11 = vpop.eup %277 }
  0x39   :  { %v177_v14 = vmul.f32 %v278_v11, %v176_v8 }
  0x3a   :  { %v167_v13 = vadd.f32 %v166_v10, %v158_v9 }
  0x3b   :  { %v280_v3 = vpop.eup %279 }
  0x3c   :  { %169 = vst.msk [vmem:[#allocation2 + $0x2] ss:$4 sm:$0x3] %vm482_vm0, %v167_v13  ;;  %v186_v16 = vmul.f32 %v280_v3, %v185_v12 }
  0x3d   :  { %v282_v17 = vpop.eup %281 }
  0x3e   :  { %v187_v18 = vadd.f32 %v186_v16, %v177_v14  ;;  %v195_v19 = vmul.f32 %v282_v17, %v194_v15 }
  0x40   :  { %v196_v20 = vadd.f32 %v195_v19, %v187_v18 }
  0x42   :  { %198 = vst.msk [vmem:[#allocation2 + $0x3] ss:$4 sm:$0x3] %vm482_vm0, %v196_v20 }
  0x49   :  { %v199_v23 = vld [vmem:[#allocation2] sm:$0xff] }
  0x4a   :  { %v202_v24 = vmul.f32 %v200_v21, %v199_v23  ;;  %v203_v25 = vmul.f32 %v201_v22, %v199_v23 }
  0x4c   :  { %204 = vst [vmem:[#allocation12] sm:$0xff] %v202_v24 }
  0x4d   :  { %205 = vst [vmem:[#allocation12 + $0x8] sm:$0xff] %v203_v25 }
  0x4e   :  { %218 = dma.vmem_to_hbm [thread:$0]  %s211_s29, 256, %s213_s2, [#allocation5], %s393_s5, %s393_s5, %s394_s6  }
  0x4f   :  { %387 = dma.done.wait [#allocation5], 256  }
  0x50   :  { %388 = vsyncadd [#allocation5], 4294967040 }
  0x51   :  { %223 = vsyncpa [#allocation4], 1 }
  0x52   :  { %224 = vsyncpa [#allocation11], 1 }
  0x53   :  { %225 = vsyncpa [#allocation5], 1 }
  0x54   :  { %226 = vsyncpa [#allocation6], 1 }
  0x55   :  { %227 = vsyncpa [#allocation8], 1 }

</bundles_post_ra>
